<compile_context>
chip_gen: v5e
topology: v5e:2x2
jax: 0.10.0
libtpu: 0.0.40
codegen_flags: <defaults>
</compile_context>

<pallas_src>
import jax
import jax.numpy as jnp
from jax.experimental import pallas as pl
from jax.experimental.pallas import tpu as pltpu

_LANES = 128
# 4096 x 128 f32 = 2 MiB per tile; in+out, double-buffered -> ~8 MiB VMEM.
# Multiple of 32 sublanes, so bf16 / int8 sublane packing is also satisfied.
_TILE_ROWS = 4096


def _identity_kernel(x_ref, o_ref):
    # Straight VMEM tile copy.
    o_ref[...] = x_ref[...]


def _identity_copy_2d(x2d, tile_rows):
    rows, cols = x2d.shape
    grid = (pl.cdiv(rows, tile_rows),)
    cost = pl.CostEstimate(
        flops=0,
        transcendentals=0,
        bytes_accessed=2 * x2d.size * x2d.dtype.itemsize,
    )
    return pl.pallas_call(
        _identity_kernel,
        out_shape=jax.ShapeDtypeStruct((rows, cols), x2d.dtype),
        grid=grid,
        in_specs=[pl.BlockSpec((tile_rows, cols), lambda i: (i, 0))],
        out_specs=pl.BlockSpec((tile_rows, cols), lambda i: (i, 0)),
        # Identity: let XLA alias the output onto the input buffer so no new
        # HBM allocation (and, when donated, no round trip) is needed.
        input_output_aliases={0: 0},
        compiler_params=pltpu.CompilerParams(
            dimension_semantics=("parallel",),
        ),
        cost_estimate=cost,
    )(x2d)


def stock_solver_forward(x):
    """Identity forward pass implemented via a Pallas TPU copy kernel."""
    orig_shape = x.shape
    total = x.size

    if total == 0:
        return x  # nothing to copy

    if total % _LANES == 0:
        # Lane-dense view: last dim = 128 -> full vreg lanes, unmasked stores.
        rows = total // _LANES
        cols = _LANES
    else:
        # Fallback: keep the original trailing dim; a full-extent lane block
        # is always legal regardless of (8, 128) divisibility.
        cols = orig_shape[-1] if len(orig_shape) > 0 else 1
        rows = total // cols

    x2d = x.reshape(rows, cols)
    tile_rows = min(rows, _TILE_ROWS)
    out2d = _identity_copy_2d(x2d, tile_rows)
    return out2d.reshape(orig_shape)


# Jit the wrapper so the reshape glue fuses into layout plumbing around the
# aliased pallas_call (no extra HBM copies for the views).
stock_solver_forward_jit = jax.jit(stock_solver_forward)


if __name__ == "__main__":
    key = jax.random.PRNGKey(0)
    # Small NCHW input consistent with the module's conv-style interface.
    x = jax.random.normal(key, (2, 4, 16, 16), dtype=jnp.float32)

    y = jax.block_until_ready(stock_solver_forward_jit(x))

    assert y.shape == x.shape
    assert y.dtype == x.dtype
    assert bool(jnp.array_equal(y, x))

    print("KERNEL_OK")
</pallas_src>

<mosaic_0001>
module attributes {stable_mosaic.version = 11 : i64} {
  func.func @_identity_kernel(%arg0: i32, %arg1: memref<16x128xf32, #tpu.memory_space<vmem>>, %arg2: memref<16x128xf32, #tpu.memory_space<vmem>>) attributes {dimension_semantics = [#tpu.dimension_semantics<parallel>], iteration_bounds = array<i64: 1>, scalar_prefetch = 0 : i64, scratch_operands = 0 : i64, tpu.core_type = #tpu.core_type<tc>, window_params = [{transform_indices = @transform_0, window_bounds = array<i64: 16, 128>}, {transform_indices = @transform_1, window_bounds = array<i64: 16, 128>}]} {
    %c0 = arith.constant 0 : index
    %c0_0 = arith.constant 0 : index
    %0 = vector.load %arg1[%c0, %c0_0] : memref<16x128xf32, #tpu.memory_space<vmem>>, vector<16x128xf32>
    %c0_1 = arith.constant 0 : index
    %c0_2 = arith.constant 0 : index
    %1 = vector.load %arg2[%c0_1, %c0_2] : memref<16x128xf32, #tpu.memory_space<vmem>>, vector<16x128xf32>
    tpu.vector_store %arg2[%c0_1, %c0_2], %0 {strides = array<i32>} : memref<16x128xf32, #tpu.memory_space<vmem>>, vector<16x128xf32>,
    return
  }
  func.func @transform_0(%arg0: i32) -> (i32, i32) {
    %c0_i32 = arith.constant 0 : i32
    %c0_i32_0 = arith.constant 0 : i32
    return %arg0, %c0_i32 : i32, i32
  }
  func.func @transform_1(%arg0: i32) -> (i32, i32) {
    %c0_i32 = arith.constant 0 : i32
    %c0_i32_0 = arith.constant 0 : i32
    return %arg0, %c0_i32 : i32, i32
  }
}

</mosaic_0001>

<bundles_post_ra>
// kernel: stock_solver_forward.1
= control target key start
LH: loop header
LB: loop body
LE: loop exit
PB: predicated region body
PF: predicated region fallthrough
CT: control target
= control target key end

     0   :  { %s38_s0 = inlined_call_operand.vmem [shape: f32[16,128], index: 0, kind: input, shape index: {}, may-alias: {0,1}]   ;;  %s39_s1 = inlined_call_operand.vmem [shape: f32[16,128], index: 1, kind: output, shape index: {}, may-alias: {0,1}]  }
   0x1   :  { %v8_v0 = vld [vmem:[%s38_s0] sm:$0xff]  ;;  %v9_v1 = vld [vmem:[%s38_s0 + $0x8] sm:$0xff] }
   0x2   :  { %10 = vst [vmem:[%s39_s1] sm:$0xff] %v8_v0 }
   0x3   :  { %11 = vst [vmem:[%s39_s1 + $0x8] sm:$0xff] %v9_v1 }

</bundles_post_ra>
